<compile_context>
chip_gen: v7x
topology: tpu7x:2x2x1
jax: 0.10.0
libtpu: 0.0.40
codegen_flags: <defaults>
</compile_context>

<pallas_src>
import numpy as np
import jax
import jax.numpy as jnp
from jax.experimental import pallas as pl
from jax.experimental.pallas import tpu as pltpu


def _cdiv(a, b):
    return (a + b - 1) // b


def _round_up(x, m):
    return _cdiv(x, m) * m


_CHUNK_U = 8  # sublane-group chunk for the register-blocked scat build


def _user_graph_sample_kernel(w_ref, g_ref, f_ref, o_ref, acc_ref, scat_ref):
    """One (user tile, feature-row tile) grid step.

    w_ref    : [TU, K]  user_matrix tile   (invariant along the n axis)
    g_ref    : [TU, K]  user_graph tile    (invariant along the n axis)
    f_ref    : [TN, D]  feature-row tile   (streamed along the n axis)
    o_ref    : [TU, D]  output tile        (resident along the n axis)
    acc_ref  : [TU, D]  f32 accumulator scratch
    scat_ref : [TU, TN] scatter/weight-matrix scratch
    """
    TU, K = w_ref.shape
    TN = f_ref.shape[0]
    n = pl.program_id(1)

    @pl.when(n == 0)
    def _init():
        acc_ref[...] = jnp.zeros_like(acc_ref)

    row0 = n * TN  # first global feature row covered by this tile

    # Register-blocked build of
    #   W[u, j] = sum_k w[u, k] * (user_graph[u, k] == row0 + j)
    # in 8-sublane chunks: the [CHUNK_U, TN] accumulator and the iota stay in
    # vregs across the statically unrolled K loop and each chunk is written to
    # the VMEM scratch exactly once.
    col = jax.lax.broadcasted_iota(jnp.int32, (_CHUNK_U, TN), 1)  # hoisted

    def _build_chunk(c, carry):
        r = pl.multiple_of(c * _CHUNK_U, _CHUNK_U)
        idxc = g_ref[pl.ds(r, _CHUNK_U), :] - row0              # [CU, K] int32
        wc = w_ref[pl.ds(r, _CHUNK_U), :].astype(jnp.float32)   # [CU, K] f32
        chunk = jnp.zeros((_CHUNK_U, TN), jnp.float32)
        for k in range(K):  # static unroll; works on ~8 live vregs
            chunk = chunk + jnp.where(col == idxc[:, k:k + 1],
                                      wc[:, k:k + 1], 0.0)
        scat_ref[pl.ds(r, _CHUNK_U), :] = chunk.astype(scat_ref.dtype)
        return carry

    jax.lax.fori_loop(0, TU // _CHUNK_U, _build_chunk, 0)

    # Gather + K-way weighted reduction as one MXU matmul; the feature tile is
    # used in its native dtype, accumulation is f32 on the MXU.
    acc_ref[...] += jnp.dot(scat_ref[...], f_ref[...],
                            preferred_element_type=jnp.float32)

    @pl.when(n == pl.num_programs(1) - 1)
    def _finalize():
        # TODO(synk): for D < 128 a lane-packed ([TU/p, p*D]) or transposed
        # ([D, TU]) output layout would make this store fully lane-dense; after
        # N-tiling the store runs once per user tile (not once per grid step),
        # so it is not store-slot bound and is kept D-native for lowering
        # robustness.
        o_ref[...] = acc_ref[...].astype(o_ref.dtype)


def user_graph_sample(features, user_graph, user_matrix, *,
                      tile_u=512, tile_n=512):
    """Pallas equivalent of User_Graph_sample.forward."""
    U, K = user_graph.shape
    N, D = features.shape
    out_dtype = jnp.result_type(user_matrix.dtype, features.dtype)

    # bf16 tables: build the scatter matrix in bf16 too (one-hot zeros are
    # exact; only the K weights round) so the contraction uses the bf16 MXU.
    scat_dtype = (features.dtype if features.dtype == jnp.bfloat16
                  else jnp.float32)

    # Generation-aware VMEM limit: ~96 MiB on v5e/v6e (128 MiB physical),
    # ~48 MiB on v7x (64 MiB physical per TensorCore).
    try:
        vmem_phys = int(pltpu.get_tpu_info().vmem_capacity_bytes)
    except Exception:
        vmem_phys = 0
    if vmem_phys <= 0:
        vmem_phys = 64 * 1024 * 1024
    vmem_limit = min(vmem_phys * 3 // 4, 100 * 1024 * 1024)

    # --- user-axis tiling: balanced tiles, >=2 tiles when U > 8 so the
    # "parallel" axis can split across v7x's two TensorCores.
    n_user_tiles = _cdiv(U, tile_u)
    if U > 8:
        n_user_tiles = max(n_user_tiles, 2)
    tu = _round_up(_cdiv(U, n_user_tiles), 8)
    n_user_tiles = _cdiv(U, tu)
    u_pad = n_user_tiles * tu

    # --- feature-row tiling: lane-aligned (multiple of 128).
    tn = max(128, min(_round_up(tile_n, 128), _round_up(N, 128)))

    # --- explicit VMEM budget: double-buffered tiles + scratches must fit
    # comfortably under the limit on every generation.
    def _vmem_bytes(tu_, tn_):
        dbl = 2  # default Pallas double-buffering of pipelined blocks
        b = dbl * tu_ * K * (user_matrix.dtype.itemsize
                             + user_graph.dtype.itemsize)
        b += dbl * tn_ * D * features.dtype.itemsize          # feature tile
        b += dbl * tu_ * D * np.dtype(out_dtype).itemsize     # output tile
        b += tu_ * D * 4                                      # f32 accumulator
        b += tu_ * tn_ * np.dtype(scat_dtype).itemsize        # scatter matrix
        b += 2 * _CHUNK_U * tn_ * 4                           # chunk/iota headroom
        return b

    budget = vmem_limit // 2
    while _vmem_bytes(tu, tn) > budget and tn > 128:
        tn = max(128, _round_up(tn // 2, 128))
    while _vmem_bytes(tu, tn) > budget and tu > 8:
        tu = max(8, _round_up(tu // 2, 8))
        n_user_tiles = _cdiv(U, tu)
        u_pad = n_user_tiles * tu

    # TODO(synk): for very large N (N >> 4*K) the dense scat@F formulation does
    # O(U*N*(D+K)) work vs. the true O(U*K*D); add a crossover to a DMA
    # row-gather path (features in HBM via memory_space=pl.ANY, scalar-
    # prefetched user_graph, per-tile make_async_copy row gathers + K-way FMA).

    n_pad = _round_up(N, tn)
    n_feat_tiles = n_pad // tn
    if n_pad != N:
        # Zero rows are never referenced (all indices < N) -> contribute 0.
        features = jnp.pad(features, ((0, n_pad - N), (0, 0)))
    if u_pad != U:
        pad = u_pad - U
        user_graph = jnp.pad(user_graph, ((0, pad), (0, 0)))    # index 0
        user_matrix = jnp.pad(user_matrix, ((0, pad), (0, 0)))  # weight 0

    out = pl.pallas_call(
        _user_graph_sample_kernel,
        out_shape=jax.ShapeDtypeStruct((u_pad, D), out_dtype),
        grid_spec=pltpu.PrefetchScalarGridSpec(
            num_scalar_prefetch=0,
            grid=(n_user_tiles, n_feat_tiles),     # reduction axis last
            in_specs=[
                pl.BlockSpec((tu, K), lambda i, n: (i, 0)),   # user_matrix tile
                pl.BlockSpec((tu, K), lambda i, n: (i, 0)),   # user_graph tile
                pl.BlockSpec((tn, D), lambda i, n: (n, 0)),   # feature-row tile
            ],
            out_specs=pl.BlockSpec((tu, D), lambda i, n: (i, 0)),
            scratch_shapes=[
                pltpu.VMEM((tu, D), jnp.float32),   # f32 accumulator
                pltpu.VMEM((tu, tn), scat_dtype),   # scatter/weight matrix
            ],
        ),
        compiler_params=pltpu.CompilerParams(
            dimension_semantics=("parallel", "arbitrary"),
            vmem_limit_bytes=int(vmem_limit),
        ),
    )(user_matrix, user_graph, features)

    out = out[:U]
    # torch .squeeze(): drop size-1 dims (matters only if U == 1 or D == 1)
    return jnp.squeeze(out)


if __name__ == "__main__":
    key = jax.random.PRNGKey(0)
    k_feat, k_graph, k_mat = jax.random.split(key, 3)

    num_nodes = 256     # rows in the feature table (users + items)
    num_user = 64
    K = 8               # sampled neighbours per user
    dim_latent = 64

    features = jax.random.normal(k_feat, (num_nodes, dim_latent),
                                 dtype=jnp.float32)
    user_graph = jax.random.randint(k_graph, (num_user, K), 0, num_nodes,
                                    dtype=jnp.int32)
    user_matrix = jax.random.uniform(k_mat, (num_user, K), dtype=jnp.float32)

    # tile_n=128 -> 2 reduction steps over the feature rows; the balanced user
    # tiling yields 2 user tiles of 32 rows, exercising both grid axes (and
    # both v7x TensorCores).  Real workloads use the 512/512 defaults.
    out = user_graph_sample(features, user_graph, user_matrix,
                            tile_u=512, tile_n=128)
    out = jax.block_until_ready(out)

    # Pure-JAX reference of the torch semantics.
    ref = jnp.squeeze(jnp.matmul(user_matrix[:, None, :], features[user_graph]))
    assert out.shape == (num_user, dim_latent)
    assert jnp.allclose(out, ref, atol=1e-5, rtol=1e-5)

    print("KERNEL_OK")
</pallas_src>

<mosaic_0001>
module attributes {stable_mosaic.version = 11 : i64} {
  func.func @_user_graph_sample_kernel(%arg0: i32, %arg1: i32, %arg2: memref<32x8xf32, #tpu.memory_space<vmem>>, %arg3: memref<32x8xi32, #tpu.memory_space<vmem>>, %arg4: memref<128x64xf32, #tpu.memory_space<vmem>>, %arg5: memref<32x64xf32, #tpu.memory_space<vmem>>, %arg6: memref<32x64xf32, #tpu.memory_space<vmem>>, %arg7: memref<32x128xf32, #tpu.memory_space<vmem>>) attributes {dimension_semantics = [#tpu.dimension_semantics<parallel>, #tpu.dimension_semantics<arbitrary>], iteration_bounds = array<i64: 2, 2>, scalar_prefetch = 0 : i64, scratch_operands = 2 : i64, tpu.core_type = #tpu.core_type<tc>, window_params = [{transform_indices = @transform_0, window_bounds = array<i64: 32, 8>}, {transform_indices = @transform_1, window_bounds = array<i64: 32, 8>}, {transform_indices = @transform_2, window_bounds = array<i64: 128, 64>}, {transform_indices = @transform_3, window_bounds = array<i64: 32, 64>}]} {
    %c0_i32 = arith.constant 0 : i32
    %0 = arith.cmpi eq, %arg1, %c0_i32 : i32
    %1 = arith.extui %0 : i1 to i32
    %c0_i32_0 = arith.constant 0 : i32
    %2 = arith.cmpi ne, %1, %c0_i32_0 : i32
    scf.if %2 {
      %cst_12 = arith.constant 0.000000e+00 : f32
      %15 = vector.broadcast %cst_12 : f32 to vector<32x64xf32>
      %c0_13 = arith.constant 0 : index
      %c0_14 = arith.constant 0 : index
      %16 = vector.load %arg6[%c0_13, %c0_14] : memref<32x64xf32, #tpu.memory_space<vmem>>, vector<32x64xf32>
      tpu.vector_store %arg6[%c0_13, %c0_14], %15 {strides = array<i32>} : memref<32x64xf32, #tpu.memory_space<vmem>>, vector<32x64xf32>,
    } else {
    }
    %c128_i32 = arith.constant 128 : i32
    %3 = arith.muli %arg1, %c128_i32 : i32
    %4 = tpu.iota {dimensions = array<i32: 1>} : vector<8x128xi32>
    %c0_i32_1 = arith.constant 0 : i32
    %c4_i32 = arith.constant 4 : i32
    %5 = arith.addi %c0_i32_1, %c4_i32 : i32
    %c1_i32 = arith.constant 1 : i32
    scf.for %arg8 = %c0_i32_1 to %5 step %c1_i32  : i32 {
      %c8_i32 = arith.constant 8 : i32
      %15 = arith.muli %arg8, %c8_i32 : i32
      %16 = tpu.assume_multiple %15, 8 : i32
      %17 = arith.index_cast %16 : i32 to index
      %c0_12 = arith.constant 0 : index
      %18 = vector.load %arg3[%17, %c0_12] : memref<32x8xi32, #tpu.memory_space<vmem>>, vector<8x8xi32>
      %19 = vector.broadcast %3 : i32 to vector<8x8xi32>
      %20 = arith.subi %18, %19 : vector<8x8xi32>
      %21 = arith.index_cast %16 : i32 to index
      %c0_13 = arith.constant 0 : index
      %22 = vector.load %arg2[%21, %c0_13] : memref<32x8xf32, #tpu.memory_space<vmem>>, vector<8x8xf32>
      %cst_14 = arith.constant 0.000000e+00 : f32
      %23 = vector.broadcast %cst_14 : f32 to vector<8x128xf32>
      %24 = vector.extract_strided_slice %20 {offsets = [0, 0], sizes = [8, 1], strides = [1, 1]} : vector<8x8xi32> to vector<8x1xi32>
      %25 = vector.broadcast %24 : vector<8x1xi32> to vector<8x128xi32>
      %26 = arith.cmpi eq, %4, %25 : vector<8x128xi32>
      %27 = vector.extract_strided_slice %22 {offsets = [0, 0], sizes = [8, 1], strides = [1, 1]} : vector<8x8xf32> to vector<8x1xf32>
      %cst_15 = arith.constant 0.000000e+00 : f32
      %28 = vector.shape_cast %27 : vector<8x1xf32> to vector<8x1xf32>
      %29 = vector.broadcast %28 : vector<8x1xf32> to vector<8x128xf32>
      %30 = vector.broadcast %cst_15 : f32 to vector<8x128xf32>
      %31 = arith.select %26, %29, %30 : vector<8x128xi1>, vector<8x128xf32>
      %32 = arith.addf %23, %31 : vector<8x128xf32>
      %33 = vector.extract_strided_slice %20 {offsets = [0, 1], sizes = [8, 1], strides = [1, 1]} : vector<8x8xi32> to vector<8x1xi32>
      %34 = vector.broadcast %33 : vector<8x1xi32> to vector<8x128xi32>
      %35 = arith.cmpi eq, %4, %34 : vector<8x128xi32>
      %36 = vector.extract_strided_slice %22 {offsets = [0, 1], sizes = [8, 1], strides = [1, 1]} : vector<8x8xf32> to vector<8x1xf32>
      %cst_16 = arith.constant 0.000000e+00 : f32
      %37 = vector.shape_cast %36 : vector<8x1xf32> to vector<8x1xf32>
      %38 = vector.broadcast %37 : vector<8x1xf32> to vector<8x128xf32>
      %39 = vector.broadcast %cst_16 : f32 to vector<8x128xf32>
      %40 = arith.select %35, %38, %39 : vector<8x128xi1>, vector<8x128xf32>
      %41 = arith.addf %32, %40 : vector<8x128xf32>
      %42 = vector.extract_strided_slice %20 {offsets = [0, 2], sizes = [8, 1], strides = [1, 1]} : vector<8x8xi32> to vector<8x1xi32>
      %43 = vector.broadcast %42 : vector<8x1xi32> to vector<8x128xi32>
      %44 = arith.cmpi eq, %4, %43 : vector<8x128xi32>
      %45 = vector.extract_strided_slice %22 {offsets = [0, 2], sizes = [8, 1], strides = [1, 1]} : vector<8x8xf32> to vector<8x1xf32>
      %cst_17 = arith.constant 0.000000e+00 : f32
      %46 = vector.shape_cast %45 : vector<8x1xf32> to vector<8x1xf32>
      %47 = vector.broadcast %46 : vector<8x1xf32> to vector<8x128xf32>
      %48 = vector.broadcast %cst_17 : f32 to vector<8x128xf32>
      %49 = arith.select %44, %47, %48 : vector<8x128xi1>, vector<8x128xf32>
      %50 = arith.addf %41, %49 : vector<8x128xf32>
      %51 = vector.extract_strided_slice %20 {offsets = [0, 3], sizes = [8, 1], strides = [1, 1]} : vector<8x8xi32> to vector<8x1xi32>
      %52 = vector.broadcast %51 : vector<8x1xi32> to vector<8x128xi32>
      %53 = arith.cmpi eq, %4, %52 : vector<8x128xi32>
      %54 = vector.extract_strided_slice %22 {offsets = [0, 3], sizes = [8, 1], strides = [1, 1]} : vector<8x8xf32> to vector<8x1xf32>
      %cst_18 = arith.constant 0.000000e+00 : f32
      %55 = vector.shape_cast %54 : vector<8x1xf32> to vector<8x1xf32>
      %56 = vector.broadcast %55 : vector<8x1xf32> to vector<8x128xf32>
      %57 = vector.broadcast %cst_18 : f32 to vector<8x128xf32>
      %58 = arith.select %53, %56, %57 : vector<8x128xi1>, vector<8x128xf32>
      %59 = arith.addf %50, %58 : vector<8x128xf32>
      %60 = vector.extract_strided_slice %20 {offsets = [0, 4], sizes = [8, 1], strides = [1, 1]} : vector<8x8xi32> to vector<8x1xi32>
      %61 = vector.broadcast %60 : vector<8x1xi32> to vector<8x128xi32>
      %62 = arith.cmpi eq, %4, %61 : vector<8x128xi32>
      %63 = vector.extract_strided_slice %22 {offsets = [0, 4], sizes = [8, 1], strides = [1, 1]} : vector<8x8xf32> to vector<8x1xf32>
      %cst_19 = arith.constant 0.000000e+00 : f32
      %64 = vector.shape_cast %63 : vector<8x1xf32> to vector<8x1xf32>
      %65 = vector.broadcast %64 : vector<8x1xf32> to vector<8x128xf32>
      %66 = vector.broadcast %cst_19 : f32 to vector<8x128xf32>
      %67 = arith.select %62, %65, %66 : vector<8x128xi1>, vector<8x128xf32>
      %68 = arith.addf %59, %67 : vector<8x128xf32>
      %69 = vector.extract_strided_slice %20 {offsets = [0, 5], sizes = [8, 1], strides = [1, 1]} : vector<8x8xi32> to vector<8x1xi32>
      %70 = vector.broadcast %69 : vector<8x1xi32> to vector<8x128xi32>
      %71 = arith.cmpi eq, %4, %70 : vector<8x128xi32>
      %72 = vector.extract_strided_slice %22 {offsets = [0, 5], sizes = [8, 1], strides = [1, 1]} : vector<8x8xf32> to vector<8x1xf32>
      %cst_20 = arith.constant 0.000000e+00 : f32
      %73 = vector.shape_cast %72 : vector<8x1xf32> to vector<8x1xf32>
      %74 = vector.broadcast %73 : vector<8x1xf32> to vector<8x128xf32>
      %75 = vector.broadcast %cst_20 : f32 to vector<8x128xf32>
      %76 = arith.select %71, %74, %75 : vector<8x128xi1>, vector<8x128xf32>
      %77 = arith.addf %68, %76 : vector<8x128xf32>
      %78 = vector.extract_strided_slice %20 {offsets = [0, 6], sizes = [8, 1], strides = [1, 1]} : vector<8x8xi32> to vector<8x1xi32>
      %79 = vector.broadcast %78 : vector<8x1xi32> to vector<8x128xi32>
      %80 = arith.cmpi eq, %4, %79 : vector<8x128xi32>
      %81 = vector.extract_strided_slice %22 {offsets = [0, 6], sizes = [8, 1], strides = [1, 1]} : vector<8x8xf32> to vector<8x1xf32>
      %cst_21 = arith.constant 0.000000e+00 : f32
      %82 = vector.shape_cast %81 : vector<8x1xf32> to vector<8x1xf32>
      %83 = vector.broadcast %82 : vector<8x1xf32> to vector<8x128xf32>
      %84 = vector.broadcast %cst_21 : f32 to vector<8x128xf32>
      %85 = arith.select %80, %83, %84 : vector<8x128xi1>, vector<8x128xf32>
      %86 = arith.addf %77, %85 : vector<8x128xf32>
      %87 = vector.extract_strided_slice %20 {offsets = [0, 7], sizes = [8, 1], strides = [1, 1]} : vector<8x8xi32> to vector<8x1xi32>
      %88 = vector.broadcast %87 : vector<8x1xi32> to vector<8x128xi32>
      %89 = arith.cmpi eq, %4, %88 : vector<8x128xi32>
      %90 = vector.extract_strided_slice %22 {offsets = [0, 7], sizes = [8, 1], strides = [1, 1]} : vector<8x8xf32> to vector<8x1xf32>
      %cst_22 = arith.constant 0.000000e+00 : f32
      %91 = vector.shape_cast %90 : vector<8x1xf32> to vector<8x1xf32>
      %92 = vector.broadcast %91 : vector<8x1xf32> to vector<8x128xf32>
      %93 = vector.broadcast %cst_22 : f32 to vector<8x128xf32>
      %94 = arith.select %89, %92, %93 : vector<8x128xi1>, vector<8x128xf32>
      %95 = arith.addf %86, %94 : vector<8x128xf32>
      %96 = arith.index_cast %16 : i32 to index
      %c0_23 = arith.constant 0 : index
      %97 = vector.load %arg7[%96, %c0_23] : memref<32x128xf32, #tpu.memory_space<vmem>>, vector<8x128xf32>
      tpu.vector_store %arg7[%96, %c0_23], %95 {strides = array<i32>} : memref<32x128xf32, #tpu.memory_space<vmem>>, vector<8x128xf32>,
    }
    %c4_i32_2 = arith.constant 4 : i32
    %c0 = arith.constant 0 : index
    %c0_3 = arith.constant 0 : index
    %6 = vector.load %arg6[%c0, %c0_3] : memref<32x64xf32, #tpu.memory_space<vmem>>, vector<32x64xf32>
    %c0_4 = arith.constant 0 : index
    %c0_5 = arith.constant 0 : index
    %7 = vector.load %arg7[%c0_4, %c0_5] : memref<32x128xf32, #tpu.memory_space<vmem>>, vector<32x128xf32>
    %c0_6 = arith.constant 0 : index
    %c0_7 = arith.constant 0 : index
    %8 = vector.load %arg4[%c0_6, %c0_7] : memref<128x64xf32, #tpu.memory_space<vmem>>, vector<128x64xf32>
    %cst = arith.constant dense<0.000000e+00> : vector<32x64xf32>
    %9 = tpu.matmul %7, %8, %cst {dimension_numbers = #tpu.dot_dimension_numbers<[1], [0], [0], [1], [0, 0, 1, 1], [], []>} : vector<32x128xf32>, vector<128x64xf32>, vector<32x64xf32> -> vector<32x64xf32>
    %10 = arith.addf %6, %9 : vector<32x64xf32>
    %c0_8 = arith.constant 0 : index
    %c0_9 = arith.constant 0 : index
    %11 = vector.load %arg6[%c0_8, %c0_9] : memref<32x64xf32, #tpu.memory_space<vmem>>, vector<32x64xf32>
    tpu.vector_store %arg6[%c0_8, %c0_9], %10 {strides = array<i32>} : memref<32x64xf32, #tpu.memory_space<vmem>>, vector<32x64xf32>,
    %c1_i32_10 = arith.constant 1 : i32
    %12 = arith.cmpi eq, %arg1, %c1_i32_10 : i32
    %13 = arith.extui %12 : i1 to i32
    %c0_i32_11 = arith.constant 0 : i32
    %14 = arith.cmpi ne, %13, %c0_i32_11 : i32
    scf.if %14 {
      %c0_12 = arith.constant 0 : index
      %c0_13 = arith.constant 0 : index
      %15 = vector.load %arg6[%c0_12, %c0_13] : memref<32x64xf32, #tpu.memory_space<vmem>>, vector<32x64xf32>
      %c0_14 = arith.constant 0 : index
      %c0_15 = arith.constant 0 : index
      %16 = vector.load %arg5[%c0_14, %c0_15] : memref<32x64xf32, #tpu.memory_space<vmem>>, vector<32x64xf32>
      tpu.vector_store %arg5[%c0_14, %c0_15], %15 {strides = array<i32>} : memref<32x64xf32, #tpu.memory_space<vmem>>, vector<32x64xf32>,
    } else {
    }
    return
  }
  func.func @transform_0(%arg0: i32, %arg1: i32) -> (i32, i32) {
    %c0_i32 = arith.constant 0 : i32
    %c0_i32_0 = arith.constant 0 : i32
    return %arg0, %c0_i32 : i32, i32
  }
  func.func @transform_1(%arg0: i32, %arg1: i32) -> (i32, i32) {
    %c0_i32 = arith.constant 0 : i32
    %c0_i32_0 = arith.constant 0 : i32
    return %arg0, %c0_i32 : i32, i32
  }
  func.func @transform_2(%arg0: i32, %arg1: i32) -> (i32, i32) {
    %c0_i32 = arith.constant 0 : i32
    %c0_i32_0 = arith.constant 0 : i32
    return %arg1, %c0_i32 : i32, i32
  }
  func.func @transform_3(%arg0: i32, %arg1: i32) -> (i32, i32) {
    %c0_i32 = arith.constant 0 : i32
    %c0_i32_0 = arith.constant 0 : i32
    return %arg0, %c0_i32 : i32, i32
  }
}

</mosaic_0001>

<bundles_post_ra>
// kernel: tpu_custom_call.1
= control target key start
LH: loop header
LB: loop body
LE: loop exit
PB: predicated region body
PF: predicated region fallthrough
CT: control target
= control target key end

     0   :  { %8 = vsyncpa [#allocation5], 0  ;;  %s1169_s0 = inlined_call_operand.vmem [shape: f32[64,8], index: 0, kind: input, shape index: {}]   ;;  %s1170_s1 = inlined_call_operand.vmem [shape: s32[64,8], index: 1, kind: input, shape index: {}]   ;;  %s1171_s2 = inlined_call_operand.vmem [shape: f32[256,64], index: 2, kind: input, shape index: {}]   ;;  %s1172_s3 = inlined_call_operand.hbm [shape: f32[64,64], index: 3, kind: output, shape index: {}]  }
   0x1   :  { %10 = vsyncpa [#allocation5 + $0x1], 0  ;;  %s956_s12 = smov 0   ;;  %s958_s13 = smov 0  }
   0x2   :  { %s960_s14 = smov 0   ;;  %s962_s15 = smov 0  }
   0x3   :  { %s964_s16 = smov 0   ;;  %s966_s17 = smov 0  }
   0x4   :  { %s968_s18 = smov 0   ;;  %s970_s19 = smov 0  }
   0x5 LB: > { %s588_s20 = sadd.s32 4294967295, %s918_s19   ;;  %s589_s21 = sadd.s32 4294967294, %s918_s19   ;;  %s918_s19 = sphi %s970_s19, %s16_s19   ;;  %s914_s18 = sphi %s968_s18, %s1186_s18   ;;  %s910_s17 = sphi %s966_s17, %s1185_s17   ;;  %s906_s16 = sphi %s964_s16, %s1184_s16   ;;  %s902_s15 = sphi %s962_s15, %s1183_s15   ;;  %s898_s14 = sphi %s960_s14, %s1182_s14   ;;  %s894_s13 = sphi %s958_s13, %s1181_s13   ;;  %s890_s12 = sphi %s956_s12, %s1180_s12  }
   0x6   : > { %s25_s22 = sadd.s32 1, %s910_s17  ;;  %s28_s23 = sadd.s32 1, %s914_s18 }
   0x7   : > { %p26_p0 = scmp.ge.s32.totalorder %s25_s22, 2  ;;  %p123_p1 = scmp.ne.s32.totalorder %s898_s14, %s894_s13 }
   0x8   : > { %p124_p2 = scmp.eq.s32.totalorder %s588_s20, 3  ;;  %p129_p4 = scmp.ne.s32.totalorder %s894_s13, %s890_s12 }
   0x9   : > { %s1188_s22 = smov (%p26_p0, %s25_s22), 0  ;;  %s1190_s23 = smov (!%p26_p0, %s28_s23), %s914_s18 }
   0xa   : > { %p1005_p3 = por %p124_p2, %p123_p1  ;;  %p30_p5 = scmp.ge.s32.totalorder %s1190_s23, 2 }
   0xb   : > { %p130_p6 = scmp.eq.s32.totalorder %s589_s21, 3  ;;  %p592_p7 = scmp.ge.s32.totalorder %s918_s19, 1 }
   0xc   : > { %p175_p8 = scmp.lt.s32.totalorder %s918_s19, 5  ;;  %s1192_s23 = smov (%p30_p5, %s1190_s23), 0 }
   0xd   : > { %1176 = sst [smem:[#allocation7_spill]] %s1192_s23  ;;  %p1015_p9 = por %p130_p6, %p129_p4 }
   0xe   : > { %p176_p10 = pnand %p592_p7, %p175_p8  ;;  %s110_s26 = ssub.s32 %s914_s18, %s1192_s23 }
   0xf   : > { %s113_s27 = sadd.s32 1, %s898_s14  ;;  %p111_p11 = scmp.eq.s32.totalorder %s110_s26, 0 }
  0x10   : > { %179 = sbr.rel (%p176_p10) target bundleno = 472 (0x1d8), region = 32  ;;  %s1173_s29 = sand.u32 (!%p176_p10), 1, %s894_s13  }
  0x11   : > { %s1023_s28 = scalar_select %p111_p11, %s898_s14, %s113_s27  }
  0x12   : > { %s594_s30 = sshll.u32 (!%p176_p10), %s906_s16, 2  ;;  %s593_s4 = sshll.u32 (!%p176_p10), %s1173_s29, 5 }
  0x13   : > { %p210_p12 = scmp.lt.s32.totalorder (!%p176_p10), %s594_s30, 7  ;;  %s598_s5 = sshll.u32 (!%p176_p10), %s902_s15, 4 }
  0x14   : > { %p222_p13 = scmp.lt.s32.totalorder (!%p176_p10), %s598_s5, 31  ;;  %s1045_s23 = scalar_lea.vmem (!%p176_p10), [#allocation4], %s593_s4 }
  0x15   : > { %p600_p0 = scmp.ne.s32.totalorder (!%p176_p10), %s902_s15, 0 }
  0x17   : > { %s1194_s30 = smov (!%p210_p12, %s594_s30), 7  ;;  %s1196_s5 = smov (!%p222_p13, %s598_s5), 31 }
  0x18   : > { %s595_s6 = sshll.u32 %s1194_s30, 3  ;;  %s599_s21 = sshll.u32 %s1196_s5, 3  ;;  %vm232_vm0 = vcmask (!%p600_p0), 523264   ;;  %v924_v0 = vmov (!%p600_p0), 0.0  }
  0x19   : > { %s1033_s9 = scalar_lea.vmem %s1169_s0, %s595_s6  ;;  %s1038_s20 = scalar_lea.vmem %s1170_s1, %s595_s6  ;;  %233 = vst.msk [vmem:[#allocation2] sm:$0xff] (!%p600_p0), %vm232_vm0, %v924_v0  ;;  %234 = vst.msk [vmem:[#allocation2 + $0x8] sm:$0xff] (!%p600_p0), %vm232_vm0, %v924_v0 }
  0x1a   : > { %s1043_s29 = scalar_lea.vmem %s1171_s2, %s599_s21  ;;  %231 = sbr.rel (%p600_p0) target bundleno = 33 (0x21), region = 36  ;;  %235 = vst.msk [vmem:[#allocation2 + $0x10] sm:$0xff] (!%p600_p0), %vm232_vm0, %v924_v0  ;;  %236 = vst.msk [vmem:[#allocation2 + $0x18] sm:$0xff] (!%p600_p0), %vm232_vm0, %v924_v0 }
  0x21 PF: > { %s601_s30 = sshll.u32 %s902_s15, 7  ;;  %v238_v1 = vlaneseq  ;;  %s1051_s5 = smov 0  }
  0x23   : > { %v1049_v2 = vand.u32 127, %v238_v1 }
  0x24 LB: >> { %v925_v3 = vmov 0   ;;  %s1057_s4 = sshll.u32 %s922_s5, 3  ;;  %v249_v4 = vstv %s601_s30  ;;  %v926_v8 = vmov 1   ;;  %v927_v9 = vmov 2   ;;  %s245_s5 = sadd.s32 1, %s922_s5   ;;  %s922_s5 = sphi %s1051_s5, %s245_s5  }
  0x25   : >> { %808 = vset.pattern.permute.xlu1 %v925_v3  ;;  %806 = vset.pattern.permute.xlu0 %v925_v3  ;;  %s251_s6 = scalar_lea.vmem %s1033_s9, %s1057_s4  ;;  %s247_s7 = scalar_lea.vmem %s1038_s20, %s1057_s4  ;;  %v928_v10 = vmov 3   ;;  %v929_v11 = vmov 4   ;;  %v930_v12 = vmov 5   ;;  %v931_v13 = vmov 7  }
  0x26   : >> { %v252_v5 = vld [vmem:[%s251_s6] sm:$0xff]  ;;  %v932_v14 = vmov 6   ;;  %s334_s8 = scalar_lea.vmem [#allocation3], %s1057_s4  ;;  %p242_p1 = scmp.ge.s32.totalorder %s245_s5, 4  }
  0x27   : >> { %v248_v6 = vld [vmem:[%s247_s7] sm:$0xff]  ;;  %259 = vperm.xlu1 %808, %v252_v5   ;;  %v345_v47 = vld [vmem:[%s1043_s29 + $0x8] sm:$0xff] (%p242_p1)  ;;  %v346_v48 = vld [vmem:[%s1043_s29 + $0x10] sm:$0xff] (%p242_p1)  ;;  %vm449_vm9 = vcmask (%p242_p1), 523264   ;;  %p603_p2 = scmp.ne.s32.totalorder (%p242_p1), %s902_s15, 1 }
  0x28   : >> { %v250_v7 = vsub.s32 %v248_v6, %v249_v4  ;;  %v344_v46 = vld [vmem:[%s1043_s29] sm:$0xff] (%p242_p1)  ;;  %v347_v50 = vld [vmem:[%s1043_s29 + $0x18] sm:$0xff] (%p242_p1)  ;;  %v349_v53 = vld [vmem:[%s1043_s29 + $0x28] sm:$0xff] (%p242_p1) }
  0x29   : > { %v668_v49 = vpack.c.bf16 (%p242_p1), %v345_v47, %v344_v46  ;;  %v672_v51 = vpack.c.bf16 (%p242_p1), %v347_v50, %v346_v48  ;;  %v348_v52 = vld [vmem:[%s1043_s29 + $0x20] sm:$0xff] (%p242_p1)  ;;  %v350_v57 = vld [vmem:[%s1043_s29 + $0x30] sm:$0xff] (%p242_p1)  ;;  %v351_v58 = vld [vmem:[%s1043_s29 + $0x38] sm:$0xff] (%p242_p1) }
  0x2a   : >> { %254 = vperm.xlu0 %806, %v250_v7   ;;  %v676_v54 = vpack.c.bf16 (%p242_p1), %v349_v53, %v348_v52  ;;  %v680_v59 = vpack.c.bf16 (%p242_p1), %v351_v58, %v350_v57  ;;  %v352_v60 = vld [vmem:[%s1043_s29 + $0x40] sm:$0xff] (%p242_p1)  ;;  %v353_v61 = vld [vmem:[%s1043_s29 + $0x48] sm:$0xff] (%p242_p1)  ;;  %v354_v63 = vld [vmem:[%s1043_s29 + $0x50] sm:$0xff] (%p242_p1) }
  0x2b   : >> { %809 = vset.pattern.permute.xlu1 %v926_v8  ;;  %669 = vmatprep.subr.bf16.mxu0 (%p242_p1), %v668_v49  ;;  %v684_v62 = vpack.c.bf16 (%p242_p1), %v353_v61, %v352_v60  ;;  %v355_v0 = vld [vmem:[%s1043_s29 + $0x58] sm:$0xff] (%p242_p1)  ;;  %v357_v3 = vld [vmem:[%s1043_s29 + $0x68] sm:$0xff] (%p242_p1) }
  0x2c   : >> { %269 = vperm.xlu1 %809, %v252_v5   ;;  %700 = vmatprep.subr.bf16.mxu1 (%p242_p1), %v668_v49  ;;  %v688_v1 = vpack.c.bf16 (%p242_p1), %v355_v0, %v354_v63  ;;  %v359_v6 = vld [vmem:[%s1043_s29 + $0x78] sm:$0xff] (%p242_p1) }
  0x2d   : > { %671 = vmatpush3.bf16.msra.mxu0 (%p242_p1), %v668_v49  ;;  %708 = vmatpush3.bf16.msra.mxu1 (%p242_p1), %v668_v49 }
  0x2e   : >> { %807 = vset.pattern.permute.xlu0 %v926_v8  ;;  %673 = vmatprep.subr.bf16.mxu0 (%p242_p1), %v672_v51 }
  0x2f   : >> { %265 = vperm.xlu0 %807, %v250_v7   ;;  %701 = vmatprep.subr.bf16.mxu1 (%p242_p1), %v672_v51 }
  0x30   : >> { %810 = vset.pattern.permute.xlu1 %v927_v9 }
  0x31   : >> { %275 = vperm.xlu1 %810, %v250_v7   ;;  %675 = vmatpush3.bf16.msra.mxu0 (%p242_p1), %v672_v51 }
  0x32   : > { %709 = vmatpush3.bf16.msra.mxu1 (%p242_p1), %v672_v51  ;;  %677 = vmatprep.subr.bf16.mxu0 (%p242_p1), %v676_v54 }
  0x33   : >> { %811 = vset.pattern.permute.xlu0 %v927_v9  ;;  %702 = vmatprep.subr.bf16.mxu1 (%p242_p1), %v676_v54 }
  0x34   : >> { %279 = vperm.xlu0 %811, %v252_v5  }
  0x35   : >> { %812 = vset.pattern.permute.xlu1 %v928_v10  ;;  %679 = vmatpush3.bf16.msra.mxu0 (%p242_p1), %v676_v54  ;;  %v337_v10 = vld [vmem:[#allocation2 + $0x8] sm:$0xff] (%p242_p1) }
  0x36   : >> { %285 = vperm.xlu1 %812, %v250_v7   ;;  %710 = vmatpush3.bf16.msra.mxu1 (%p242_p1), %v676_v54 }
  0x37   : > { %681 = vmatprep.subr.bf16.mxu0 (%p242_p1), %v680_v59  ;;  %703 = vmatprep.subr.bf16.mxu1 (%p242_p1), %v680_v59 }
  0x38   : >> { %813 = vset.pattern.permute.xlu0 %v929_v11 }
  0x39   : >> { %295 = vperm.xlu0 %813, %v250_v7   ;;  %683 = vmatpush3.bf16.msra.mxu0 (%p242_p1), %v680_v59 }
  0x3a   : >> { %289 = vperm.xlu1 %812, %v252_v5   ;;  %711 = vmatpush3.bf16.msra.mxu1 (%p242_p1), %v680_v59 }
  0x3b   : > { %685 = vmatprep.subr.bf16.mxu0 (%p242_p1), %v684_v62  ;;  %704 = vmatprep.subr.bf16.mxu1 (%p242_p1), %v684_v62 }
  0x3d   : >> { %816 = vset.pattern.permute.xlu0 %v930_v12  ;;  %687 = vmatpush3.bf16.msra.mxu0 (%p242_p1), %v684_v62 }
  0x3e   : >> { %309 = vperm.xlu0 %816, %v252_v5   ;;  %814 = vset.pattern.permute.xlu1 %v929_v11  ;;  %v339_v11 = vld [vmem:[#allocation2 + $0x18] sm:$0xff] (%p242_p1) }
  0x3f   : >> { %299 = vperm.xlu1 %814, %v252_v5   ;;  %712 = vmatpush3.bf16.msra.mxu1 (%p242_p1), %v684_v62 }
  0x40   : > { %689 = vmatprep.subr.bf16.mxu0 (%p242_p1), %v688_v1  ;;  %705 = vmatprep.subr.bf16.mxu1 (%p242_p1), %v688_v1 }
  0x41   : > { %691 = vmatpush3.bf16.msra.mxu0 (%p242_p1), %v688_v1 }
  0x42   : >> { %818 = vset.pattern.permute.xlu0 %v931_v13 }
  0x43   : >> { %325 = vperm.xlu0 %818, %v250_v7   ;;  %815 = vset.pattern.permute.xlu1 %v930_v12  ;;  %v336_v12 = vld [vmem:[#allocation2] sm:$0xff] (%p242_p1) }
  0x44   : >> { %305 = vperm.xlu1 %815, %v250_v7   ;;  %713 = vmatpush3.bf16.msra.mxu1 (%p242_p1), %v688_v1 }
  0x48   : >> { %817 = vset.pattern.permute.xlu1 %v932_v14 }
  0x49   : >> { %315 = vperm.xlu1 %817, %v250_v7  }
  0x4d   : >> { %319 = vperm.xlu1 %817, %v252_v5  }
  0x51   : >> { %819 = vset.pattern.permute.xlu1 %v931_v13  ;;  %v338_v13 = vld [vmem:[#allocation2 + $0x10] sm:$0xff] (%p242_p1) }
  0x52   : >> { %329 = vperm.xlu1 %819, %v252_v5   ;;  %v358_v5 = vld [vmem:[%s1043_s29 + $0x70] sm:$0xff] (%p242_p1) }
  0x53   : > { %v696_v7 = vpack.c.bf16 (%p242_p1), %v359_v6, %v358_v5 }
  0xa6   : >> { %v260_v15 = vpop.permute.xlu1 %259 }
  0xa9   : >> { %v255_v18 = vpop.permute.xlu0 %254 }
  0xaa   : >> { %vm256_vm2 = vcmp.eq.s32.totalorder %v1049_v2, %v255_v18 }
  0xab   : >> { %v270_v16 = vpop.permute.xlu1 %269  ;;  %v262_v27 = vsel %vm256_vm2, %v260_v15, 0.0 }
  0xae   : >> { %v266_v21 = vpop.permute.xlu0 %265 }
  0xaf   : >> { %vm267_vm1 = vcmp.eq.s32.totalorder %v1049_v2, %v266_v21 }
  0xb0   : >> { %v276_v17 = vpop.permute.xlu1 %275  ;;  %v272_v25 = vsel %vm267_vm1, %v270_v16, 0.0 }
  0xb1   : >> { %vm277_vm3 = vcmp.eq.s32.totalorder %v1049_v2, %v276_v17  ;;  %v273_v29 = vadd.f32 %v272_v25, %v262_v27 }
  0xb3   : >> { %v280_v23 = vpop.permute.xlu0 %279 }
  0xb4   : >> { %v282_v28 = vsel %vm277_vm3, %v280_v23, 0.0 }
  0xb5   : >> { %v286_v19 = vpop.permute.xlu1 %285  ;;  %v283_v33 = vadd.f32 %v282_v28, %v273_v29 }
  0xb6   : >> { %vm287_vm4 = vcmp.eq.s32.totalorder %v1049_v2, %v286_v19 }
  0xb8   : >> { %v296_v26 = vpop.permute.xlu0 %295 }
  0xb9   : >> { %v290_v20 = vpop.permute.xlu1 %289  ;;  %vm297_vm5 = vcmp.eq.s32.totalorder %v1049_v2, %v296_v26 }
  0xba   : >> { %v292_v30 = vsel %vm287_vm4, %v290_v20, 0.0 }
  0xbb   : >> { %v293_v35 = vadd.f32 %v292_v30, %v283_v33 }
  0xbd   : >> { %v310_v31 = vpop.permute.xlu0 %309 }
  0xbe   : >> { %v300_v22 = vpop.permute.xlu1 %299 }
  0xbf   : >> { %v302_v34 = vsel %vm297_vm5, %v300_v22, 0.0 }
  0xc0   : >> { %v303_v39 = vadd.f32 %v302_v34, %v293_v35 }
  0xc2   : >> { %v326_v38 = vpop.permute.xlu0 %325 }
  0xc3   : >> { %v306_v24 = vpop.permute.xlu1 %305  ;;  %vm327_vm8 = vcmp.eq.s32.totalorder %v1049_v2, %v326_v38 }
  0xc4   : >> { %vm307_vm6 = vcmp.eq.s32.totalorder %v1049_v2, %v306_v24 }
  0xc5   : >> { %v312_v36 = vsel %vm307_vm6, %v310_v31, 0.0 }
  0xc6   : >> { %v313_v41 = vadd.f32 %v312_v36, %v303_v39 }
  0xc8   : >> { %v316_v32 = vpop.permute.xlu1 %315 }
  0xc9   : >> { %vm317_vm7 = vcmp.eq.s32.totalorder %v1049_v2, %v316_v32  ;;  %v356_v2 = vld [vmem:[%s1043_s29 + $0x60] sm:$0xff] (%p242_p1) }
  0xca   : > { %v692_v4 = vpack.c.bf16 (%p242_p1), %v357_v3, %v356_v2 }
  0xcc   : >> { %v320_v37 = vpop.permute.xlu1 %319  ;;  %693 = vmatprep.subr.bf16.mxu0 (%p242_p1), %v692_v4  ;;  %706 = vmatprep.subr.bf16.mxu1 (%p242_p1), %v692_v4 }
  0xcd   : >> { %v322_v40 = vsel %vm317_vm7, %v320_v37, 0.0  ;;  %695 = vmatpush3.bf16.msra.mxu0 (%p242_p1), %v692_v4  ;;  %714 = vmatpush3.bf16.msra.mxu1 (%p242_p1), %v692_v4 }
  0xce   : >> { %v323_v42 = vadd.f32 %v322_v40, %v313_v41  ;;  %697 = vmatprep.subr.bf16.mxu0 (%p242_p1), %v696_v7  ;;  %707 = vmatprep.subr.bf16.mxu1 (%p242_p1), %v696_v7 }
  0xcf   : > { %244 = sbr.rel (!%p242_p1) target bundleno = 36 (0x24), region = 91 }
  0xd1   : >> { %v330_v43 = vpop.permute.xlu1 %329  ;;  %699 = vmatpush3.bf16.msra.mxu0 (%p242_p1), %v696_v7  ;;  %715 = vmatpush3.bf16.msra.mxu1 (%p242_p1), %v696_v7 }
  0xd2   : >> { %v332_v44 = vsel %vm327_vm8, %v330_v43, 0.0 }
  0xd3   : >> { %v333_v45 = vadd.f32 %v332_v44, %v323_v42 }
  0xd5   : >> { %335 = vst [vmem:[%s334_s8] sm:$0xff] %v333_v45 }
  0xdc   : > { %v340_v55 = vld [vmem:[#allocation3] sm:$0xff]  ;;  %v342_v56 = vld [vmem:[#allocation3 + $0x10] sm:$0xff]  ;;  %v341_v8 = vld [vmem:[#allocation3 + $0x8] sm:$0xff] }
  0xdd   : > { %662 = vmatprep.mubr.f32.mxu0 %v340_v55  ;;  %665 = vmatprep.mubr.f32.mxu1 %v342_v56  ;;  %v343_v9 = vld [vmem:[#allocation3 + $0x18] sm:$0xff] }
  0xde   : > { %663 = vmatmul.mubr.f32.vlgmr.msra.gmra.mrb[0].mxu0 %v341_v8  ;;  %666 = vmatmul.mubr.f32.vlgmr.msra.gmra.mrb[0].mxu1 %v343_v9 }
 0x1af   : > { %457 = sbr.rel (%p603_p2) target bundleno = 446 (0x1be), region = 47 }
 0x1b1   : > { %v664_v14 = vpop.f32.mrb[0].mxu0  ;;  %v667_v15 = vpop.f32.mrb[0].mxu1 }
 0x1b2   : > { %v446_v16 = vadd.f32 %v664_v14, %v337_v10  ;;  %v448_v17 = vadd.f32 %v667_v15, %v339_v11  ;;  %v426_v18 = vpop.f32.mrb[1].mxu0  ;;  %v436_v19 = vpop.f32.mrb[1].mxu1 }
 0x1b3   : > { %v445_v20 = vadd.f32 %v426_v18, %v336_v12  ;;  %v447_v21 = vadd.f32 %v436_v19, %v338_v13 }
 0x1b4   : > { %451 = vst.msk [vmem:[#allocation2 + $0x8] sm:$0xff] %vm449_vm9, %v446_v16  ;;  %453 = vst.msk [vmem:[#allocation2 + $0x18] sm:$0xff] %vm449_vm9, %v448_v17 }
 0x1b5   : > { %450 = vst.msk [vmem:[#allocation2] sm:$0xff] %vm449_vm9, %v445_v20  ;;  %452 = vst.msk [vmem:[#allocation2 + $0x10] sm:$0xff] %vm449_vm9, %v447_v21 }
 0x1bb   : > { %v459_v23 = vld [vmem:[#allocation2 + $0x8] sm:$0xff]  ;;  %v461_v25 = vld [vmem:[#allocation2 + $0x18] sm:$0xff] }
 0x1bc   : > { %v458_v22 = vld [vmem:[#allocation2] sm:$0xff]  ;;  %v460_v24 = vld [vmem:[#allocation2 + $0x10] sm:$0xff]  ;;  %463 = vst.msk [vmem:[%s1045_s23 + $0x8] sm:$0xff] %vm449_vm9, %v459_v23  ;;  %465 = vst.msk [vmem:[%s1045_s23 + $0x18] sm:$0xff] %vm449_vm9, %v461_v25 }
 0x1bd   : > { %462 = vst.msk [vmem:[%s1045_s23] sm:$0xff] %vm449_vm9, %v458_v22  ;;  %464 = vst.msk [vmem:[%s1045_s23 + $0x10] sm:$0xff] %vm449_vm9, %v460_v24 }
 0x1be PF: > { %s609_s15 = sshll.u32 %s906_s16, 9  ;;  %s480_s11 = sshll.u32 %s1045_s23, 4  ;;  %s1113_s11 = int_to_ptr.vmem [resolvable:$true] %s480_s11 }
 0x1bf   : > { %s1110_s10 = scalar_lea.hbm %s1172_s3, %s609_s15  ;;  %s1178_s20 = sand.u32 1, %s894_s13  }
 0x1c0   : > { %s1117_s21 = scalar_lea.sflag [#allocation5], %s1178_s20  ;;  %s820_s26 = scalar_lea.vmem %s1113_s11, 512 }
 0x1c1   : > { %p821_p4 = scmp.ne.s32.totalorder %s1113_s11, %s820_s26  ;;  %s933_s16 = smov [#allocation4]  }
 0x1c2   : > { %s824_s27 = sshll.u32 %s933_s16, 4  ;;  %s825_s27 = int_to_ptr.vmem [resolvable:$false] %s824_s27 }
 0x1c3   : > { %p822_p5 = pnand %p821_p4, %p1005_p3  ;;  %s826_s30 = scalar_lea.vmem %s825_s27, 1024 }
 0x1c4   : > { %p827_p7 = scmp.lt.s32.totalorder %s1113_s11, %s825_s27  ;;  %p828_p8 = scmp.lt.s32.totalorder %s826_s30, %s820_s26 }
 0x1c5   : > { %p823_p6 = pneg %p822_p5 }
 0x1c6   : > { %p829_p10 = por %p828_p8, %p827_p7 }
 0x1c8   : > { %p830_p11 = pnand %p829_p10, %p823_p6 }
 0x1ca   : > { %833 = shalt.err (!%p830_p11)
}
 0x1cb   : > { %s834_s23 = scalar_lea.hbm %s1110_s10, 512  ;;  %s838_s6 = scalar_lea.hbm %s1172_s3, 1024 }
 0x1cc   : > { %p835_p12 = scmp.ne.s32.totalorder %s1110_s10, %s834_s23  ;;  %p839_p1 = scmp.lt.u32.totalorder %s1110_s10, %s1172_s3 }
 0x1cd   : > { %p840_p2 = scmp.lt.u32.totalorder %s838_s6, %s834_s23  ;;  %p842_p5 = scmp.lt.u32.totalorder %s834_s23, %s1110_s10 }
 0x1ce   : > { %p836_p13 = pnand %p835_p12, %p1005_p3 }
 0x1cf   : > { %p841_p4 = por %p840_p2, %p839_p1 }
 0x1d0   : > { %p837_p0 = pneg %p836_p13 }
 0x1d1   : > { %p843_p6 = por %p842_p5, %p841_p4 }
 0x1d3   : > { %p844_p7 = pnand %p843_p6, %p837_p0 }
 0x1d5   : > { %847 = shalt.err (!%p844_p7)
}
 0x1d6   : > { %s934_s15 = smov 128   ;;  %s935_s29 = smov 8  }
 0x1d7   : > { %716 = dma.vmem_to_hbm [thread:$0]  (%p1005_p3), %s1113_s11, 512, %s1110_s10, %s1117_s21, %s934_s15, %s934_s15, %s935_s29  }
 0x1d8 PF: > { %p722_p8 = scmp.ge.s32.totalorder %s918_s19, 2  ;;  %s495_s9 = sand.u32 1, %s890_s12  }
 0x1d9   : > { %s496_s20 = scalar_lea.sflag [#allocation5], %s495_s9 }
 0x1da   : > { %p719_p10 = pnand %p722_p8, %p1015_p9 }
 0x1dc   : > { %885 = dma.done.wait (!%p719_p10), %s496_s20, 512  }
 0x1dd   : > { %887 = vsyncadd (!%p719_p10), %s496_s20, 4294966784  ;;  %s16_s19 = sadd.s32 1, %s918_s19   ;;  %s1179_s24 = sld [smem:[#allocation7_spill]] }
 0x1de   : > { %p13_p11 = scmp.ge.s32.totalorder %s16_s19, 6   ;;  %s1180_s12 = smov %s894_s13 }
 0x1df   : > { %s1181_s13 = smov %s898_s14  ;;  %s1182_s14 = smov %s1023_s28 }
 0x1e0   : > { %s1183_s15 = smov %s910_s17  ;;  %s1184_s16 = smov %s914_s18 }
 0x1e1   : > { %s1185_s17 = smov %s1188_s22  ;;  %15 = sbr.rel (!%p13_p11) target bundleno = 5 (0x5), region = 102 }
 0x1e3   : > { %s1186_s18 = smov %s1179_s24 }
 0x1e8   :  { %501 = vsyncpa [#allocation5], 1 }
 0x1e9   :  { %503 = vsyncpa [#allocation5 + $0x1], 1 }

</bundles_post_ra>
